<compile_context>
chip_gen: v7x
topology: tpu7x:2x2x1
jax: 0.10.0
libtpu: 0.0.40
codegen_flags: <defaults>
</compile_context>

<pallas_src>
import functools

import numpy as np
import jax
import jax.numpy as jnp
from jax.experimental import pallas as pl
from jax.experimental.pallas import tpu as pltpu


def _fused_attention_kernel(x_ref, w_ref, o_ref, *, dim_kp, dim_vp, compute_dtype):
    # x_ref: (b_tile, n, dim_q) block, native dtype (f32).
    # w_ref: (dim_q, 2*dim_kp + dim_vp) fused projection weight; 1/sqrt(dim_k)
    #        already folded into the Q columns; already in compute_dtype.
    # o_ref: (b_tile, n, dim_vp) lane-dense output block.
    b_tile, n, dim_q = x_ref.shape
    d_total = w_ref.shape[1]

    x = x_ref[...]
    if compute_dtype is not None:
        x = x.astype(compute_dtype)           # in-kernel VPU cast (x DMA'd once)
    w = w_ref[...]

    # One fused Q/K/V projection GEMM on the MXU, f32 accumulation.
    # reshape is layout-preserving for n % 8 == 0.
    xf = x.reshape(b_tile * n, dim_q)
    qkv = jnp.dot(xf, w, preferred_element_type=jnp.float32)
    qkv = qkv.reshape(b_tile, n, d_total)

    # 128-aligned (lane-tile aligned) column slices -> free views.
    q = qkv[:, :, :dim_kp]                    # pre-scaled by 1/sqrt(dim_k)
    k = qkv[:, :, dim_kp:2 * dim_kp]
    v = qkv[:, :, 2 * dim_kp:]
    if compute_dtype is not None:
        q = q.astype(compute_dtype)
        k = k.astype(compute_dtype)
        v = v.astype(compute_dtype)

    # Scores without materialising k^T (contract last axes); f32 accumulation.
    s = jnp.einsum("bqd,bkd->bqk", q, k, preferred_element_type=jnp.float32)

    # Numerically stable softmax, all intermediates f32.
    m = jnp.max(s, axis=-1, keepdims=True)
    p = jnp.exp(s - m)
    denom = jnp.sum(p, axis=-1, keepdims=True)
    attn = p * pl.reciprocal(denom, approx=False)     # exact, EUP slot

    pv = attn.astype(compute_dtype) if compute_dtype is not None else attn
    att = jnp.einsum("bqk,bkv->bqv", pv, v, preferred_element_type=jnp.float32)
    o_ref[...] = att.astype(o_ref.dtype)


def _round_up(x, m):
    return ((x + m - 1) // m) * m


def _vmem_capacity_bytes():
    """Per-TensorCore VMEM capacity; conservative fallback if the query fails."""
    try:
        info = pltpu.get_tpu_info()
        for attr in ("vmem_capacity_bytes", "vmem_bytes", "vmem_size_bytes"):
            v = getattr(info, attr, None)
            if v:
                return int(v)
    except Exception:
        pass
    return 64 * 1024 * 1024   # v7x per-TC VMEM; safe lower bound everywhere


def _per_batch_vmem_bytes(n, dim_q, d_total, dim_vp, c_itemsize, out_itemsize):
    """Per-batch-element f32/compute working set, incl. double-buffer terms."""
    f32 = 4
    b = 0
    b += 2 * n * dim_q * f32            # x block (native dtype), double-buffered
    b += n * d_total * f32              # fused qkv activations (f32 accumulation)
    b += 2 * n * n * f32                # scores + exp(p)
    b += n * dim_vp * f32               # attn @ v accumulation
    b += 2 * n * dim_vp * out_itemsize  # output block, double-buffered
    if c_itemsize != f32:               # in-kernel compute_dtype copies
        b += n * dim_q * c_itemsize     # cast x
        b += n * d_total * c_itemsize   # cast q/k/v
        b += n * n * c_itemsize         # cast attn
    return b


def _pick_batch_tile(batch, per_batch_bytes, budget_bytes):
    max_bt = max(1, budget_bytes // max(per_batch_bytes, 1))
    if batch >= 2:
        # Guarantee >=2 grid steps: keeps both v7x TensorCores busy and lets
        # the x/out DMAs pipeline across steps.
        max_bt = min(max_bt, batch // 2)
    bt = 1
    for d in range(1, batch + 1):
        if batch % d == 0 and d <= max_bt:
            bt = d
    return int(bt)


def self_attention(x, wq, wk, wv, *, compute_dtype=None):
    """Forward pass of the PyTorch SelfAttention module.

    x:  (batch, n, dim_q)
    wq, wk: (dim_k, dim_q)   nn.Linear weight layout (out_features, in_features)
    wv: (dim_v, dim_q)
    compute_dtype: optional MXU operand dtype (e.g. jnp.bfloat16 — safe on
                   v5e/v6e/v7x); accumulation / softmax always stay in f32.
    """
    batch, n, dim_q = x.shape
    dim_k = wq.shape[0]
    dim_v = wv.shape[0]
    scale = 1.0 / np.sqrt(dim_k)

    # Lane-dense padding of the k/v column groups to the 128-lane tile.
    dim_kp = _round_up(dim_k, 128)
    dim_vp = _round_up(dim_v, 128)
    d_total = 2 * dim_kp + dim_vp

    def pad_cols(w_t, target):
        return jnp.pad(w_t, ((0, 0), (0, target - w_t.shape[1])))

    # Fused projection weight; fold 1/sqrt(dim_k) into the Q columns.
    w_qkv = jnp.concatenate([
        pad_cols(wq.T * scale, dim_kp),
        pad_cols(wk.T, dim_kp),
        pad_cols(wv.T, dim_vp),
    ], axis=1)

    c_itemsize = 4
    if compute_dtype is not None:
        # Only the small, grid-invariant weight is cast outside the kernel;
        # x keeps its native dtype and is cast on the VPU inside the kernel.
        w_qkv = w_qkv.astype(compute_dtype)
        c_itemsize = np.dtype(compute_dtype).itemsize
    w_itemsize = w_qkv.dtype.itemsize
    out_itemsize = x.dtype.itemsize

    # Generation-aware VMEM policy (64 MiB/TC on v7x, 128 MiB on v5e/v6e).
    vmem_cap = _vmem_capacity_bytes()
    vmem_limit = int(min((vmem_cap * 3) // 4, 100 * 1024 * 1024))
    step_budget = (vmem_cap * 3) // 8             # ~24 MiB v7x, ~48 MiB v5e/v6e
    weight_bytes = 2 * dim_q * d_total * w_itemsize   # weight block, double-buffered
    per_b = _per_batch_vmem_bytes(n, dim_q, d_total, dim_vp, c_itemsize, out_itemsize)
    b_tile = _pick_batch_tile(batch, per_b, max(step_budget - weight_bytes, 0))
    grid = (batch // b_tile,)

    kernel = functools.partial(_fused_attention_kernel,
                               dim_kp=dim_kp, dim_vp=dim_vp,
                               compute_dtype=compute_dtype)

    out_padded = pl.pallas_call(
        kernel,
        out_shape=jax.ShapeDtypeStruct((batch, n, dim_vp), x.dtype),
        grid_spec=pltpu.PrefetchScalarGridSpec(
            num_scalar_prefetch=0,
            grid=grid,
            in_specs=[
                pl.BlockSpec((b_tile, n, dim_q), lambda b: (b, 0, 0)),
                pl.BlockSpec((dim_q, d_total), lambda b: (0, 0)),
            ],
            out_specs=pl.BlockSpec((b_tile, n, dim_vp), lambda b: (b, 0, 0)),
        ),
        compiler_params=pltpu.CompilerParams(
            dimension_semantics=("parallel",),
            vmem_limit_bytes=vmem_limit,
        ),
    )(x, w_qkv)

    # Drop the inert zero-padding columns (lane-dense stores inside the kernel
    # are the measured win; this is a cheap contiguous XLA slice).
    return out_padded[..., :dim_v]


def self_attention_ref(x, wq, wk, wv):
    dim_k = wq.shape[0]
    q = x @ wq.T
    k = x @ wk.T
    v = x @ wv.T
    dist = jnp.einsum("bnd,bmd->bnm", q, k) * (1.0 / np.sqrt(dim_k))
    dist = jax.nn.softmax(dist, axis=-1)
    return jnp.einsum("bnm,bmv->bnv", dist, v)


if __name__ == "__main__":
    # Shapes implied by the module: x = (batch, n, dim_q)
    batch, n = 2, 8
    dim_q, dim_k, dim_v = 32, 16, 32

    key = jax.random.PRNGKey(0)
    kx, kq, kk, kv = jax.random.split(key, 4)

    x = jax.random.normal(kx, (batch, n, dim_q), dtype=jnp.float32)

    # Deterministic "nn.Linear" weights in PyTorch layout (out, in).
    bound = 1.0 / np.sqrt(dim_q)
    wq = jax.random.uniform(kq, (dim_k, dim_q), jnp.float32, -bound, bound)
    wk = jax.random.uniform(kk, (dim_k, dim_q), jnp.float32, -bound, bound)
    wv = jax.random.uniform(kv, (dim_v, dim_q), jnp.float32, -bound, bound)

    ref = self_attention_ref(x, wq, wk, wv)

    # f32 operand path (exact EUP reciprocal).
    out = jax.block_until_ready(self_attention(x, wq, wk, wv))
    assert out.shape == (batch, n, dim_v)
    np.testing.assert_allclose(np.asarray(out), np.asarray(ref),
                               rtol=5e-3, atol=5e-3)

    # bf16 operand path (f32 accumulation) — the recommended perf setting.
    out_bf16 = jax.block_until_ready(
        self_attention(x, wq, wk, wv, compute_dtype=jnp.bfloat16))
    np.testing.assert_allclose(np.asarray(out_bf16), np.asarray(ref),
                               rtol=3e-2, atol=3e-2)

    print("KERNEL_OK")
</pallas_src>

<mosaic_0001>
module attributes {stable_mosaic.version = 11 : i64} {
  func.func @_fused_attention_kernel(%arg0: i32, %arg1: memref<1x8x32xf32, #tpu.memory_space<vmem>>, %arg2: memref<32x384xf32, #tpu.memory_space<vmem>>, %arg3: memref<1x8x128xf32, #tpu.memory_space<vmem>>) attributes {dimension_semantics = [#tpu.dimension_semantics<parallel>], iteration_bounds = array<i64: 2>, scalar_prefetch = 0 : i64, scratch_operands = 0 : i64, tpu.core_type = #tpu.core_type<tc>, window_params = [{transform_indices = @transform_0, window_bounds = array<i64: 1, 8, 32>}, {pipeline_mode = #tpu.pipeline_mode<synchronous>, transform_indices = @transform_1, window_bounds = array<i64: 32, 384>}, {transform_indices = @transform_2, window_bounds = array<i64: 1, 8, 128>}]} {
    %c0 = arith.constant 0 : index
    %c0_0 = arith.constant 0 : index
    %c0_1 = arith.constant 0 : index
    %0 = vector.load %arg1[%c0, %c0_0, %c0_1] : memref<1x8x32xf32, #tpu.memory_space<vmem>>, vector<1x8x32xf32>
    %c0_2 = arith.constant 0 : index
    %c0_3 = arith.constant 0 : index
    %1 = vector.load %arg2[%c0_2, %c0_3] : memref<32x384xf32, #tpu.memory_space<vmem>>, vector<32x384xf32>
    %2 = vector.shape_cast %0 : vector<1x8x32xf32> to vector<8x32xf32>
    %cst = arith.constant dense<0.000000e+00> : vector<8x384xf32>
    %3 = tpu.matmul %2, %1, %cst {dimension_numbers = #tpu.dot_dimension_numbers<[1], [0], [0], [1], [0, 0, 1, 1], [], []>} : vector<8x32xf32>, vector<32x384xf32>, vector<8x384xf32> -> vector<8x384xf32>
    %4 = vector.shape_cast %3 : vector<8x384xf32> to vector<1x8x384xf32>
    %5 = vector.extract_strided_slice %4 {offsets = [0, 0, 0], sizes = [1, 8, 128], strides = [1, 1, 1]} : vector<1x8x384xf32> to vector<1x8x128xf32>
    %6 = vector.extract_strided_slice %4 {offsets = [0, 0, 128], sizes = [1, 8, 128], strides = [1, 1, 1]} : vector<1x8x384xf32> to vector<1x8x128xf32>
    %7 = vector.extract_strided_slice %4 {offsets = [0, 0, 256], sizes = [1, 8, 128], strides = [1, 1, 1]} : vector<1x8x384xf32> to vector<1x8x128xf32>
    "tpu.trace_start"() <{level = 10 : i32, message = "bqd,bkd->bqk"}> : () -> ()
    %cst_4 = arith.constant dense<0.000000e+00> : vector<1x8x8xf32>
    %8 = tpu.matmul %5, %6, %cst_4 {dimension_numbers = #tpu.dot_dimension_numbers<[2], [2], [1], [1], [0, 0, 0, 1, 1, 1], [0], [0]>} : vector<1x8x128xf32>, vector<1x8x128xf32>, vector<1x8x8xf32> -> vector<1x8x8xf32>
    "tpu.trace_stop"() : () -> ()
    %cst_5 = arith.constant dense<0xFF800000> : vector<1x8xf32>
    %9 = vector.multi_reduction <maximumf>, %8, %cst_5 [2] : vector<1x8x8xf32> to vector<1x8xf32>
    %10 = vector.shape_cast %9 : vector<1x8xf32> to vector<1x8x1xf32>
    %11 = vector.broadcast %10 : vector<1x8x1xf32> to vector<1x8x8xf32>
    %12 = arith.subf %8, %11 : vector<1x8x8xf32>
    %13 = math.exp %12 : vector<1x8x8xf32>
    %cst_6 = arith.constant dense<0.000000e+00> : vector<1x8xf32>
    %14 = vector.multi_reduction <add>, %13, %cst_6 [2] : vector<1x8x8xf32> to vector<1x8xf32>
    %15 = vector.shape_cast %14 : vector<1x8xf32> to vector<1x8x1xf32>
    %16 = tpu.reciprocal %15 : vector<1x8x1xf32> -> vector<1x8x1xf32>
    %17 = vector.broadcast %16 : vector<1x8x1xf32> to vector<1x8x8xf32>
    %18 = arith.mulf %13, %17 : vector<1x8x8xf32>
    "tpu.trace_start"() <{level = 10 : i32, message = "bqk,bkv->bqv"}> : () -> ()
    %cst_7 = arith.constant dense<0.000000e+00> : vector<1x8x128xf32>
    %19 = tpu.matmul %18, %7, %cst_7 {dimension_numbers = #tpu.dot_dimension_numbers<[2], [1], [1], [2], [0, 0, 0, 1, 1, 2], [0], [0]>} : vector<1x8x8xf32>, vector<1x8x128xf32>, vector<1x8x128xf32> -> vector<1x8x128xf32>
    "tpu.trace_stop"() : () -> ()
    %c0_8 = arith.constant 0 : index
    %c0_9 = arith.constant 0 : index
    %c0_10 = arith.constant 0 : index
    %20 = vector.load %arg3[%c0_8, %c0_9, %c0_10] : memref<1x8x128xf32, #tpu.memory_space<vmem>>, vector<1x8x128xf32>
    tpu.vector_store %arg3[%c0_8, %c0_9, %c0_10], %19 {strides = array<i32>} : memref<1x8x128xf32, #tpu.memory_space<vmem>>, vector<1x8x128xf32>,
    return
  }
  func.func @transform_0(%arg0: i32) -> (i32, i32, i32) {
    %c0_i32 = arith.constant 0 : i32
    %c0_i32_0 = arith.constant 0 : i32
    %c0_i32_1 = arith.constant 0 : i32
    return %arg0, %c0_i32, %c0_i32_0 : i32, i32, i32
  }
  func.func @transform_1(%arg0: i32) -> (i32, i32) {
    %c0_i32 = arith.constant 0 : i32
    %c0_i32_0 = arith.constant 0 : i32
    %c0_i32_1 = arith.constant 0 : i32
    return %c0_i32, %c0_i32_0 : i32, i32
  }
  func.func @transform_2(%arg0: i32) -> (i32, i32, i32) {
    %c0_i32 = arith.constant 0 : i32
    %c0_i32_0 = arith.constant 0 : i32
    %c0_i32_1 = arith.constant 0 : i32
    return %arg0, %c0_i32, %c0_i32_0 : i32, i32, i32
  }
}

</mosaic_0001>

<bundles_post_ra>
// kernel: tpu_custom_call.1
= control target key start
LH: loop header
LB: loop body
LE: loop exit
PB: predicated region body
PF: predicated region fallthrough
CT: control target
= control target key end

     0   :  { %7 = vsyncpa [#allocation3], 0  ;;  %s1070_s0 = inlined_call_operand.hbm [shape: f32[2,8,32], index: 0, kind: input, shape index: {}]   ;;  %s1071_s1 = inlined_call_operand.hbm [shape: f32[32,384], index: 1, kind: input, shape index: {}]   ;;  %s1072_s2 = inlined_call_operand.hbm [shape: f32[2,8,128], index: 2, kind: output, shape index: {}]  }
   0x1   :  { %9 = vsyncpa [#allocation3 + $0x1], 0 }
   0x2   :  { %10 = vsyncpa [#allocation6], 0 }
   0x3   :  { %11 = vsyncpa [#allocation4], 0 }
   0x4   :  { %13 = vsyncpa [#allocation4 + $0x1], 0  ;;  %s862_s9 = smov 0   ;;  %s864_s10 = smov 0  }
   0x5   :  { %s866_s11 = smov 0   ;;  %s868_s12 = smov 0  }
   0x6 LB: > { %s883_s13 = sadd.s32 4294967295, %s837_s12   ;;  %s582_s14 = sadd.s32 4294967294, %s837_s12   ;;  %s837_s12 = sphi %s868_s12, %s1092_s12   ;;  %s833_s11 = sphi %s866_s11, %s1091_s11   ;;  %s829_s10 = sphi %s864_s10, %s1090_s10   ;;  %s825_s9 = sphi %s862_s9, %s1089_s9  }
   0x7   : > { %p39_p0 = scmp.ne.s32.totalorder %s829_s10, %s825_s9  ;;  %p1073_p1 = scmp.eq.s32.totalorder %s883_s13, 0 }
   0x8   : > { %p90_p3 = scmp.eq.s32.totalorder %s582_s14, 1  ;;  %p583_p5 = scmp.ge.s32.totalorder %s837_s12, 1 }
   0x9   : > { %p892_p4 = por %p1073_p1, %p39_p0  ;;  %p97_p7 = scmp.lt.s32.totalorder %s837_s12, 3 }
   0xa   : > { %p897_p6 = por %p90_p3, %p39_p0  ;;  %s839_s18 = smov [#allocation5]  }
   0xb   : > { %s1076_s15 = scalar_select %p892_p4, 1, 0 }
   0xc   : > { %s1077_s16 = scalar_select %p897_p6, 1, 0 }
   0xd   : > { %p902_p8 = pnand %p583_p5, %p97_p7  ;;  %s109_s19 = sshll.u32 %s839_s18, 4  ;;  %s906_s19 = int_to_ptr.vmem [resolvable:$true] %s109_s19 }
   0xe   : > { %s918_s21 = sadd.s32 1, %s837_s12   ;;  %s26_s22 = sadd.s32 1, %s833_s11 }
   0xf   : > { %s1078_s17 = scalar_select %p902_p8, 1, 0 }
  0x10   : > { %p651_p9 = pneg %p902_p8  ;;  %s23_s23 = ssub.s32 %s837_s12, %s918_s21 }
  0x11   : > { %s709_s26 = scalar_lea.hbm %s1071_s1, 1536 }
  0x12   : > { %p913_p11 = pnand %p651_p9, %p1073_p1  ;;  %p710_p12 = scmp.ne.s32.totalorder %s1071_s1, %s709_s26 }
  0x13   : > { %p716_p5 = scmp.lt.u32.totalorder %s709_s26, %s1071_s1 }
  0x14   : > { %p711_p13 = pneg %p913_p11 }
  0x16   : > { %p712_p0 = pnand %p711_p13, %p710_p12 }
  0x18   : > { %p713_p3 = pneg %p712_p0 }
  0x1a   : > { %p718_p7 = pnand %p716_p5, %p713_p3 }
  0x1c   : > { %721 = shalt.err (!%p718_p7)
}
  0x1d   : > { %s722_s3 = scalar_lea.vmem %s906_s19, 1536  ;;  %p730_p2 = scmp.lt.s32.totalorder %s906_s19, %s906_s19 }
  0x1e   : > { %p723_p9 = scmp.ne.s32.totalorder %s906_s19, %s722_s3  ;;  %p731_p6 = scmp.lt.s32.totalorder %s722_s3, %s722_s3 }
  0x20   : > { %p725_p10 = pnand %p723_p9, %p711_p13  ;;  %p732_p4 = por %p731_p6, %p730_p2 }
  0x22   : > { %p726_p1 = pneg %p725_p10 }
  0x24   : > { %p733_p8 = pnand %p732_p4, %p726_p1 }
  0x26   : > { %736 = shalt.err (!%p733_p8)
}
  0x27   : > { %s840_s4 = smov 384   ;;  %s841_s5 = smov 24  }
  0x28   : > { %654 = dma.hbm_to_vmem [thread:$0]  (!%p913_p11), %s1071_s1, 1536, %s906_s19, [#allocation6], %s840_s4, %s840_s4, %s841_s5  }
  0x29   : > { %p24_p2 = scmp.eq.s32.totalorder %s23_s23, 0  ;;  %p33_p1 = scmp.ne.s32.totalorder %s833_s11, %s829_s10 }
  0x2a   : > { %p34_p4 = scmp.eq.s32.totalorder %s837_s12, 0  ;;  %p664_p6 = scmp.lt.s32.totalorder %s837_s12, 2 }
  0x2b   : > { %s949_s8 = scalar_select %p24_p2, %s833_s11, %s26_s22  }
  0x2c   : > { %p35_p8 = por %p34_p4, %p33_p1  ;;  %p1080_p10 = scmp.eq.s32.totalorder %s883_s13, 1 }
  0x2d   : > { %s123_s18 = sand.u32 1, %s833_s11   ;;  %s587_s24 = sshll.u32 %s837_s12, 7 }
  0x2e   : > { %p953_p12 = por %p1080_p10, %p33_p1  ;;  %s586_s25 = sshll.u32 %s123_s18, 3 }
  0x2f   : > { %s962_s27 = scalar_lea.hbm %s1070_s0, %s587_s24  ;;  %s127_s19 = scalar_lea.vmem [#allocation2], %s586_s25 }
  0x30   : > { %s134_s22 = sshll.u32 %s127_s19, 4  ;;  %p964_p11 = pnand %p664_p6, %p35_p8  ;;  %s968_s22 = int_to_ptr.vmem [resolvable:$true] %s134_s22 }
  0x31   : > { %s124_s28 = scalar_lea.sflag [#allocation3], %s123_s18  ;;  %s737_s29 = scalar_lea.hbm %s962_s27, 128 }
  0x32   : > { %p738_p13 = scmp.ne.s32.totalorder %s962_s27, %s737_s29  ;;  %p739_p0 = pneg %p964_p11 }
  0x33   : > { %s742_s4 = scalar_lea.hbm %s1070_s0, 256  ;;  %p743_p7 = scmp.lt.u32.totalorder %s962_s27, %s1070_s0 }
  0x34   : > { %p740_p3 = pnand %p739_p0, %p738_p13  ;;  %p744_p9 = scmp.lt.u32.totalorder %s742_s4, %s737_s29 }
  0x35   : > { %p746_p1 = scmp.lt.u32.totalorder %s737_s29, %s962_s27 }
  0x36   : > { %p741_p5 = pneg %p740_p3  ;;  %p745_p2 = por %p744_p9, %p743_p7 }
  0x38   : > { %p747_p4 = por %p746_p1, %p745_p2 }
  0x3a   : > { %p748_p6 = pnand %p747_p4, %p741_p5 }
  0x3c   : > { %751 = shalt.err (!%p748_p6)
}
  0x3d   : > { %s752_s7 = scalar_lea.vmem %s968_s22, 128  ;;  %s842_s18 = smov [#allocation2]  }
  0x3e   : > { %p753_p8 = scmp.ne.s32.totalorder %s968_s22, %s752_s7  ;;  %s757_s24 = sshll.u32 %s842_s18, 4  ;;  %s758_s24 = int_to_ptr.vmem [resolvable:$false] %s757_s24 }
  0x3f   : > { %s759_s25 = scalar_lea.vmem %s758_s24, 256  ;;  %p760_p3 = scmp.lt.s32.totalorder %s968_s22, %s758_s24 }
  0x40   : > { %p755_p10 = pnand %p753_p8, %p739_p0  ;;  %p761_p7 = scmp.lt.s32.totalorder %s759_s25, %s752_s7 }
  0x42   : > { %p756_p13 = pneg %p755_p10  ;;  %p762_p9 = por %p761_p7, %p760_p3 }
  0x44   : > { %p763_p2 = pnand %p762_p9, %p756_p13 }
  0x46   : > { %766 = shalt.err (!%p763_p2)
}
  0x47   : > { %658 = dma.hbm_to_vmem [thread:$0]  (!%p964_p11), %s962_s27, 128, %s968_s22, %s124_s28  }
  0x48   : > { %p1083_p5 = scmp.ne.s32.totalorder %s1078_s17, 0 }
  0x49   : > { %s998_s20 = sand.u32 (!%p1083_p5), 1, %s829_s10   ;;  %p1084_p0 = scmp.ne.s32.totalorder (!%p1083_p5), %s1076_s15, 0 }
  0x4a   : > { %143 = sbr.rel (%p1083_p5) target bundleno = 1064 (0x428), region = 28  ;;  %s589_s26 = sshll.u32 (!%p1083_p5), %s998_s20, 3 }
  0x4b   : > { %s146_s19 = scalar_lea.sflag (!%p1083_p5), [#allocation3], %s998_s20  ;;  %s149_s29 = scalar_lea.vmem (!%p1083_p5), [#allocation2], %s589_s26 }
  0x51   : > { %812 = dma.done.wait (%p1084_p0), %s146_s19, 128  }
  0x52   : > { %814 = vsyncadd (%p1084_p0), %s146_s19, 4294967168  ;;  %p1085_p11 = scmp.eq.s32.totalorder %s883_s13, 0 }
  0x54   : > { %816 = dma.done.wait (%p1085_p11), [#allocation6], 1536   ;;  %p1086_p1 = pmov %p1085_p11 }
  0x55   : > { %v843_v0 = vmov 0.0   ;;  %v176_v1 = vld [vmem:[#allocation5 + $0x8] sm:$0xff]  ;;  %v179_v2 = vld [vmem:[#allocation5 + $0x20] sm:$0xff]  ;;  %v178_v5 = vld [vmem:[#allocation5 + $0x18] sm:$0xff]  ;;  %vm187_vm0 = vcmask 261120   ;;  %vm844_vm1 = vmmov 0  }
  0x56   : > { %818 = vsyncadd (%p1086_p1), [#allocation6], 4294965760  ;;  %255 = vmatprep.mubr.f32.mxu0 %v843_v0  ;;  %v175_v3 = vld [vmem:[#allocation5] sm:$0xff]  ;;  %v629_v4 = vpack.c.bf16 %v179_v2, %v176_v1  ;;  %v182_v6 = vld [vmem:[#allocation5 + $0x38] sm:$0xff]  ;;  %616 = vmatprep.mubr.msk.f32.mxu1 %vm844_vm1, %v843_v0  ;;  %v845_v19 = vmov 0.0|0.0   ;;  %vm402_vm2 = vcmask 64512  }
  0x57   : > { %v185_v7 = vld [vmem:[#allocation5 + $0x50] sm:$0xff]  ;;  %v631_v8 = vpack.c.bf16 %v178_v5, %v175_v3  ;;  %v184_v11 = vld [vmem:[#allocation5 + $0x48] sm:$0xff]  ;;  %v183_v18 = vld [vmem:[#allocation5 + $0x40] sm:$0xff]  ;;  %637 = vmatprep.subr.bf16.mxu1 %v845_v19  ;;  %s173_s15 = scalar_lea.vmem [#allocation7], %s589_s26  ;;  %s596_s27 = sshll.u32 %s883_s13, 7 }
  0x58   : > { %v633_v9 = vpack.c.bf16 %v185_v7, %v182_v6  ;;  %v181_v10 = vld [vmem:[#allocation5 + $0x30] sm:$0xff]  ;;  %630 = vmatprep.subr.bf16.mxu0 %v629_v4  ;;  %v180_v17 = vld [vmem:[#allocation5 + $0x28] sm:$0xff]  ;;  %v186_v21 = vld [vmem:[#allocation5 + $0x58] sm:$0xff]  ;;  %s502_s17 = sshll.u32 %s173_s15, 4  ;;  %s1028_s28 = scalar_lea.hbm %s1072_s2, %s596_s27  ;;  %s1023_s17 = int_to_ptr.vmem [resolvable:$true] %s502_s17 }
  0x59   : > { %632 = vmatpush1.bf16.msra.mxu0 %v631_v8  ;;  %v635_v12 = vpack.c.bf16 %v184_v11, %v181_v10  ;;  %v174_v13 = vld [vmem:[%s149_s29] sm:$0xff]  ;;  %v641_v22 = vpack.c.bf16 %v186_v21, %v183_v18  ;;  %s489_s30 = scalar_lea.sflag [#allocation4], %s998_s20  ;;  %s767_s3 = scalar_lea.vmem %s1023_s17, 128 }
  0x5a   : > { %634 = vmatprep.subr.bf16.mxu0 %v633_v9  ;;  %v177_v16 = vld [vmem:[#allocation5 + $0x10] sm:$0xff]  ;;  %p768_p4 = scmp.ne.s32.totalorder %s1023_s17, %s767_s3  ;;  %s846_s13 = smov [#allocation7]  }
  0x5b   : > { %v638_v20 = vpack.c.bf16 %v180_v17, %v177_v16  ;;  %s771_s4 = sshll.u32 %s846_s13, 4  ;;  %s772_s4 = int_to_ptr.vmem [resolvable:$false] %s771_s4 }
  0x5c   : > { %p769_p6 = pnand %p768_p4, %p953_p12  ;;  %s773_s5 = scalar_lea.vmem %s772_s4, 256 }
  0x5d   : > { %636 = vmatpush1.bf16.msra.mxu0 %v635_v12  ;;  %639 = vmatpush3.bf16.msra.mxu1 %v638_v20  ;;  %p774_p10 = scmp.lt.s32.totalorder %s1023_s17, %s772_s4  ;;  %p775_p13 = scmp.lt.s32.totalorder %s773_s5, %s767_s3 }
  0x5e   : > { %619 = vmatprep.subr.mxu0 %v843_v0  ;;  %640 = vmatprep.subr.bf16.mxu1 %v845_v19  ;;  %p770_p8 = pneg %p769_p6 }
  0x5f   : > { %p776_p3 = por %p775_p13, %p774_p10 }
  0x60   : > { %592 = vmatmul.mubr.msk.f32.vlgmr.msra.gmra.mrb[0].mxu0 %vm187_vm0, %v174_v13 }
  0x61   : > { %621 = vmatprep.mubr.msk.f32.mxu0 %vm844_vm1, %v843_v0  ;;  %642 = vmatpush3.bf16.msra.mxu1 %v641_v22  ;;  %p777_p7 = pnand %p776_p3, %p770_p8 }
  0x62   : > { %624 = vmatprep.subr.mxu1 %v843_v0 }
  0x64   : > { %617 = vmatmul.mubr.msk.f32.vlgmr.msra.gmra.mrb[0].mxu1 %vm187_vm0, %v174_v13 }
  0x65   : > { %626 = vmatprep.mubr.msk.f32.mxu1 %vm844_vm1, %v843_v0 }
 0x133   : > { %v257_v14 = vpop.f32.mrb[0].mxu0 }
 0x134   : > { %v259_v15 = vpop.f32.mrb[1].mxu0 }
 0x135   : > { %620 = vmatpush3.xpose.msra.mxu0 %v259_v15 }
 0x137   : > { %v328_v31 = vpop.f32.mrb[0].mxu1 }
 0x138   : > { %622 = vmatmul.mubr.f32.vlgmr.msra.gmra.mrb[2].mxu0 %v257_v14  ;;  %v618_v32 = vpop.f32.mrb[1].mxu1  ;;  %625 = vmatpush3.msra.mxu1 %v328_v31 }
 0x20b   : > { %v398_v23 = vpop.f32.mrb[2].mxu0 }
 0x20c   : > { %v623_v24 = vpop.f32.mrb[3].mxu0  ;;  %v403_v25 = vsel %vm402_vm2, %v398_v23, -inf }
 0x20d   : > { %404 = vmax.xlane.f32.xlu0 %v403_v25 }
 0x29a   : > { %v405_v26 = vpop.xlane.xlu0 %404 }
 0x29b   : > { %v406_v27 = vsub.f32 %v398_v23, %v405_v26 }
 0x29d   : > { %v407_v28 = vmul.f32 1.442695, %v406_v27 }
 0x29f   : > { %705 = vpow2.f32 %v407_v28 }
 0x2a9   : > { %v706_v29 = vpop.eup %705 }
 0x2aa   : > { %v409_v30 = vsel %vm402_vm2, %v706_v29, 0.0 }
 0x2ab   : > { %410 = vadd.xlane.f32.xlu0 %v409_v30 }
 0x338   : > { %v411_v33 = vpop.xlane.xlu0 %410 }
 0x339   : > { %707 = vrcp.f32 %v411_v33 }
 0x343   : > { %v708_v34 = vpop.eup %707 }
 0x344   : > { %v413_v35 = vmul.f32 %v708_v34, %v706_v29 }
 0x346   : > { %627 = vmatmul.mubr.msk.f32.vlgmr.msra.gmra.mrb[2].mxu1 %vm402_vm2, %v413_v35 }
 0x419   : > { %v483_v36 = vpop.f32.mrb[2].mxu1 }
 0x41a   : > { %487 = vst [vmem:[%s173_s15] sm:$0xff] %v483_v36  ;;  %v628_v37 = vpop.f32.mrb[3].mxu1 }
 0x41b   : > { %780 = shalt.err (!%p777_p7)
}
 0x41c   : > { %s781_s6 = scalar_lea.hbm %s1028_s28, 128  ;;  %s785_s24 = scalar_lea.hbm %s1072_s2, 256 }
 0x41d   : > { %p782_p9 = scmp.ne.s32.totalorder %s1028_s28, %s781_s6  ;;  %p786_p0 = scmp.lt.u32.totalorder %s1028_s28, %s1072_s2 }
 0x41e   : > { %p787_p11 = scmp.lt.u32.totalorder %s785_s24, %s781_s6  ;;  %p789_p4 = scmp.lt.u32.totalorder %s781_s6, %s1028_s28 }
 0x41f   : > { %p783_p2 = pnand %p782_p9, %p953_p12 }
 0x420   : > { %p788_p1 = por %p787_p11, %p786_p0 }
 0x421   : > { %p784_p5 = pneg %p783_p2 }
 0x422   : > { %p790_p6 = por %p789_p4, %p788_p1 }
 0x424   : > { %p791_p8 = pnand %p790_p6, %p784_p5 }
 0x426   : > { %794 = shalt.err (!%p791_p8)
}
 0x427   : > { %649 = dma.vmem_to_hbm [thread:$0]  (%p953_p12), %s1023_s17, 128, %s1028_s28, %s489_s30  }
 0x428 PF: > { %s514_s26 = sand.u32 1, %s825_s9   ;;  %p1087_p10 = scmp.ne.s32.totalorder %s1077_s16, 0 }
 0x429   : > { %p1088_p13 = scmp.ge.s32.totalorder %s837_s12, 2  ;;  %s515_s19 = scalar_lea.sflag [#allocation4], %s514_s26 }
 0x42b   : > { %p660_p3 = pnand %p1088_p13, %p1087_p10 }
 0x42d   : > { %820 = dma.done.wait (!%p660_p3), %s515_s19, 128  }
 0x42e   : > { %822 = vsyncadd (!%p660_p3), %s515_s19, 4294967168  ;;  %p16_p7 = scmp.ge.s32.totalorder %s918_s21, 4   ;;  %s1089_s9 = smov %s829_s10 }
 0x42f   : > { %s1090_s10 = smov %s833_s11  ;;  %s1091_s11 = smov %s949_s8 }
 0x430   : > { %s1092_s12 = smov %s918_s21  ;;  %18 = sbr.rel (!%p16_p7) target bundleno = 6 (0x6), region = 77 }
 0x437   :  { %520 = vsyncpa [#allocation3], 1 }
 0x438   :  { %522 = vsyncpa [#allocation3 + $0x1], 1 }
 0x439   :  { %523 = vsyncpa [#allocation6], 1 }
 0x43a   :  { %524 = vsyncpa [#allocation4], 1 }
 0x43b   :  { %526 = vsyncpa [#allocation4 + $0x1], 1 }

</bundles_post_ra>
